<compile_context>
chip_gen: v6e
topology: v6e:2x2x1
jax: 0.10.0
libtpu: 0.0.40
codegen_flags: <defaults>
</compile_context>

<pallas_src>
import functools

import jax
import jax.numpy as jnp
from jax.experimental import pallas as pl
from jax.experimental.pallas import tpu as pltpu

# ---- model hyperparameters (toy, consistent with the module) ----
HEADS = 4
HEAD_DIM = 8
DIM = 32                      # C
INNER = HEADS * HEAD_DIM      # 32
SCALE = HEAD_DIM ** (-0.5)
LN_EPS = 1e-5

B = 2                         # batch
L = 8                         # sequence length


def mhsa_kernel(x_ref, wqkv_ref, wout_ref, bout_ref, gamma_ref, beta_ref, o_ref,
                *, batch, seq):
    rows = batch * seq
    x = x_ref[...].astype(jnp.float32)                     # (rows, C)

    # QKV projection: one matmul over all batch*seq rows.
    qkv = jnp.dot(x, wqkv_ref[...], preferred_element_type=jnp.float32)  # (rows, 3*INNER)
    q = qkv[:, :INNER] * SCALE                             # scale applied once, to Q
    k = qkv[:, INNER:2 * INNER]
    v = qkv[:, 2 * INNER:]

    # (rows, INNER) -> (HEADS*batch, seq, HEAD_DIM).
    # Per-head lane slice + sublane-split reshape (last dim unchanged) +
    # leading-axis concat: all cheap / well-supported layout ops.
    def split_heads(t):
        return jnp.concatenate(
            [t[:, h * HEAD_DIM:(h + 1) * HEAD_DIM].reshape(batch, seq, HEAD_DIM)
             for h in range(HEADS)],
            axis=0)

    qh = split_heads(q)                                    # (H*B, L, D)
    kh = split_heads(k)
    vh = split_heads(v)

    # Attention for all (head, batch) pairs in two batched dot_generals.
    # Contraction is on the D axis of both operands -> no explicit transpose.
    dots = jnp.einsum('ald,amd->alm', qh, kh,
                      preferred_element_type=jnp.float32)  # (H*B, L, L)
    dots = dots - jnp.max(dots, axis=-1, keepdims=True)
    e = jnp.exp(dots)
    attn = e / jnp.sum(e, axis=-1, keepdims=True)          # exact divide (see header)
    ctx = jnp.einsum('alm,amd->ald', attn, vh,
                     preferred_element_type=jnp.float32)   # (H*B, L, D)

    # Merge heads back: (H*B, L, D) -> (rows, INNER).
    o = jnp.concatenate(
        [ctx[h * batch:(h + 1) * batch].reshape(rows, HEAD_DIM) for h in range(HEADS)],
        axis=-1)

    # Output projection with bias: one matmul over all rows.
    proj = jnp.dot(o, wout_ref[...], preferred_element_type=jnp.float32) + bout_ref[...]

    # Residual + LayerNorm over the channel dim.
    y = x + proj
    mean = jnp.mean(y, axis=-1, keepdims=True)
    var = jnp.mean((y - mean) ** 2, axis=-1, keepdims=True)
    yn = (y - mean) * jax.lax.rsqrt(var + LN_EPS)
    o_ref[...] = (yn * gamma_ref[...] + beta_ref[...]).astype(o_ref.dtype)


@jax.jit
def mhsa_forward(x, w_qkv_t, w_out_t, b_out, gamma, beta):
    # x: (B, L, C); w_qkv_t: (C, 3*INNER); w_out_t: (INNER, C);
    # b_out/gamma/beta: (1, C)
    batch, seq, dim = x.shape
    rows = batch * seq
    x2 = x.reshape(rows, dim)                              # free, wrapper-side fold

    out = pl.pallas_call(
        functools.partial(mhsa_kernel, batch=batch, seq=seq),
        out_shape=jax.ShapeDtypeStruct((rows, dim), x.dtype),
        grid=(1,),
        in_specs=[
            pl.BlockSpec((rows, dim), lambda i: (0, 0)),
            pl.BlockSpec((dim, 3 * INNER), lambda i: (0, 0)),
            pl.BlockSpec((INNER, dim), lambda i: (0, 0)),
            pl.BlockSpec((1, dim), lambda i: (0, 0)),
            pl.BlockSpec((1, dim), lambda i: (0, 0)),
            pl.BlockSpec((1, dim), lambda i: (0, 0)),
        ],
        out_specs=pl.BlockSpec((rows, dim), lambda i: (0, 0)),
        compiler_params=pltpu.CompilerParams(dimension_semantics=("arbitrary",)),
    )(x2, w_qkv_t, w_out_t, b_out, gamma, beta)
    return out.reshape(batch, seq, dim)


def mhsa_reference(x, w_qkv_t, w_out_t, b_out, gamma, beta):
    # Pure-JAX reference matching the PyTorch Multihead_self_attention forward.
    qkv = x @ w_qkv_t                                      # (B, L, 3*INNER)
    q, k, v = jnp.split(qkv, 3, axis=-1)

    def to_heads(t):
        Bb, Ll, _ = t.shape
        return t.reshape(Bb, Ll, HEADS, HEAD_DIM).transpose(0, 2, 1, 3)

    q, k, v = map(to_heads, (q, k, v))                     # (B, H, L, D)
    dots = jnp.einsum('bhid,bhjd->bhij', q, k) * SCALE
    attn = jax.nn.softmax(dots, axis=-1)
    out = jnp.einsum('bhij,bhjd->bhid', attn, v)
    out = out.transpose(0, 2, 1, 3).reshape(x.shape[0], x.shape[1], INNER)
    out = out @ w_out_t + b_out
    y = x + out
    mean = jnp.mean(y, axis=-1, keepdims=True)
    var = jnp.mean((y - mean) ** 2, axis=-1, keepdims=True)
    return (y - mean) * jax.lax.rsqrt(var + LN_EPS) * gamma + beta


if __name__ == "__main__":
    key = jax.random.PRNGKey(0)
    kx, kq, kw, kb = jax.random.split(key, 4)

    x = jax.random.normal(kx, (B, L, DIM), dtype=jnp.float32)

    # PyTorch Linear stores (out, in); we pass transposed matrices so the
    # kernel computes x @ W.T directly.
    w_qkv = jax.random.normal(kq, (3 * INNER, DIM), dtype=jnp.float32) * 0.05
    w_out = jax.random.normal(kw, (DIM, INNER), dtype=jnp.float32) * 0.05
    b_out = jax.random.normal(kb, (1, DIM), dtype=jnp.float32) * 0.05
    gamma = jnp.ones((1, DIM), dtype=jnp.float32)          # LayerNorm default init
    beta = jnp.zeros((1, DIM), dtype=jnp.float32)

    out = mhsa_forward(x, w_qkv.T, w_out.T, b_out, gamma, beta)
    jax.block_until_ready(out)

    ref = mhsa_reference(x, w_qkv.T, w_out.T, b_out, gamma, beta)
    assert out.shape == (B, L, DIM)
    assert jnp.allclose(out, ref, atol=1e-4, rtol=1e-4), "mismatch vs reference"

    print("KERNEL_OK")
</pallas_src>

<mosaic_0001>
module attributes {stable_mosaic.version = 11 : i64} {
  func.func @mhsa_kernel(%arg0: i32, %arg1: memref<16x32xf32, #tpu.memory_space<vmem>>, %arg2: memref<32x96xf32, #tpu.memory_space<vmem>>, %arg3: memref<32x32xf32, #tpu.memory_space<vmem>>, %arg4: memref<1x32xf32, #tpu.memory_space<vmem>>, %arg5: memref<1x32xf32, #tpu.memory_space<vmem>>, %arg6: memref<1x32xf32, #tpu.memory_space<vmem>>, %arg7: memref<16x32xf32, #tpu.memory_space<vmem>>) attributes {dimension_semantics = [#tpu.dimension_semantics<arbitrary>], iteration_bounds = array<i64: 1>, scalar_prefetch = 0 : i64, scratch_operands = 0 : i64, tpu.core_type = #tpu.core_type<tc>, window_params = [{pipeline_mode = #tpu.pipeline_mode<synchronous>, transform_indices = @transform_0, window_bounds = array<i64: 16, 32>}, {pipeline_mode = #tpu.pipeline_mode<synchronous>, transform_indices = @transform_1, window_bounds = array<i64: 32, 96>}, {pipeline_mode = #tpu.pipeline_mode<synchronous>, transform_indices = @transform_2, window_bounds = array<i64: 32, 32>}, {pipeline_mode = #tpu.pipeline_mode<synchronous>, transform_indices = @transform_3, window_bounds = array<i64: 1, 32>}, {pipeline_mode = #tpu.pipeline_mode<synchronous>, transform_indices = @transform_4, window_bounds = array<i64: 1, 32>}, {pipeline_mode = #tpu.pipeline_mode<synchronous>, transform_indices = @transform_5, window_bounds = array<i64: 1, 32>}, {pipeline_mode = #tpu.pipeline_mode<synchronous>, transform_indices = @transform_6, window_bounds = array<i64: 16, 32>}]} {
    %c0 = arith.constant 0 : index
    %c0_0 = arith.constant 0 : index
    %0 = vector.load %arg1[%c0, %c0_0] : memref<16x32xf32, #tpu.memory_space<vmem>>, vector<16x32xf32>
    %c0_1 = arith.constant 0 : index
    %c0_2 = arith.constant 0 : index
    %1 = vector.load %arg2[%c0_1, %c0_2] : memref<32x96xf32, #tpu.memory_space<vmem>>, vector<32x96xf32>
    %cst = arith.constant dense<0.000000e+00> : vector<16x96xf32>
    %2 = tpu.matmul %0, %1, %cst {dimension_numbers = #tpu.dot_dimension_numbers<[1], [0], [0], [1], [0, 0, 1, 1], [], []>} : vector<16x32xf32>, vector<32x96xf32>, vector<16x96xf32> -> vector<16x96xf32>
    %3 = vector.extract_strided_slice %2 {offsets = [0, 0], sizes = [16, 32], strides = [1, 1]} : vector<16x96xf32> to vector<16x32xf32>
    %cst_3 = arith.constant 0.353553385 : f32
    %4 = vector.broadcast %cst_3 : f32 to vector<16x32xf32>
    %5 = arith.mulf %3, %4 : vector<16x32xf32>
    %6 = vector.extract_strided_slice %2 {offsets = [0, 32], sizes = [16, 32], strides = [1, 1]} : vector<16x96xf32> to vector<16x32xf32>
    %7 = vector.extract_strided_slice %2 {offsets = [0, 64], sizes = [16, 32], strides = [1, 1]} : vector<16x96xf32> to vector<16x32xf32>
    %8 = vector.extract_strided_slice %5 {offsets = [0, 0], sizes = [16, 8], strides = [1, 1]} : vector<16x32xf32> to vector<16x8xf32>
    %9 = vector.shape_cast %8 : vector<16x8xf32> to vector<2x8x8xf32>
    %10 = vector.extract_strided_slice %5 {offsets = [0, 8], sizes = [16, 8], strides = [1, 1]} : vector<16x32xf32> to vector<16x8xf32>
    %11 = vector.shape_cast %10 : vector<16x8xf32> to vector<2x8x8xf32>
    %12 = vector.extract_strided_slice %5 {offsets = [0, 16], sizes = [16, 8], strides = [1, 1]} : vector<16x32xf32> to vector<16x8xf32>
    %13 = vector.shape_cast %12 : vector<16x8xf32> to vector<2x8x8xf32>
    %14 = vector.extract_strided_slice %5 {offsets = [0, 24], sizes = [16, 8], strides = [1, 1]} : vector<16x32xf32> to vector<16x8xf32>
    %15 = vector.shape_cast %14 : vector<16x8xf32> to vector<2x8x8xf32>
    %16 = tpu.concatenate %9, %11, %13, %15 in 0 : vector<2x8x8xf32>, vector<2x8x8xf32>, vector<2x8x8xf32>, vector<2x8x8xf32> -> vector<8x8x8xf32>
    %17 = vector.extract_strided_slice %6 {offsets = [0, 0], sizes = [16, 8], strides = [1, 1]} : vector<16x32xf32> to vector<16x8xf32>
    %18 = vector.shape_cast %17 : vector<16x8xf32> to vector<2x8x8xf32>
    %19 = vector.extract_strided_slice %6 {offsets = [0, 8], sizes = [16, 8], strides = [1, 1]} : vector<16x32xf32> to vector<16x8xf32>
    %20 = vector.shape_cast %19 : vector<16x8xf32> to vector<2x8x8xf32>
    %21 = vector.extract_strided_slice %6 {offsets = [0, 16], sizes = [16, 8], strides = [1, 1]} : vector<16x32xf32> to vector<16x8xf32>
    %22 = vector.shape_cast %21 : vector<16x8xf32> to vector<2x8x8xf32>
    %23 = vector.extract_strided_slice %6 {offsets = [0, 24], sizes = [16, 8], strides = [1, 1]} : vector<16x32xf32> to vector<16x8xf32>
    %24 = vector.shape_cast %23 : vector<16x8xf32> to vector<2x8x8xf32>
    %25 = tpu.concatenate %18, %20, %22, %24 in 0 : vector<2x8x8xf32>, vector<2x8x8xf32>, vector<2x8x8xf32>, vector<2x8x8xf32> -> vector<8x8x8xf32>
    %26 = vector.extract_strided_slice %7 {offsets = [0, 0], sizes = [16, 8], strides = [1, 1]} : vector<16x32xf32> to vector<16x8xf32>
    %27 = vector.shape_cast %26 : vector<16x8xf32> to vector<2x8x8xf32>
    %28 = vector.extract_strided_slice %7 {offsets = [0, 8], sizes = [16, 8], strides = [1, 1]} : vector<16x32xf32> to vector<16x8xf32>
    %29 = vector.shape_cast %28 : vector<16x8xf32> to vector<2x8x8xf32>
    %30 = vector.extract_strided_slice %7 {offsets = [0, 16], sizes = [16, 8], strides = [1, 1]} : vector<16x32xf32> to vector<16x8xf32>
    %31 = vector.shape_cast %30 : vector<16x8xf32> to vector<2x8x8xf32>
    %32 = vector.extract_strided_slice %7 {offsets = [0, 24], sizes = [16, 8], strides = [1, 1]} : vector<16x32xf32> to vector<16x8xf32>
    %33 = vector.shape_cast %32 : vector<16x8xf32> to vector<2x8x8xf32>
    %34 = tpu.concatenate %27, %29, %31, %33 in 0 : vector<2x8x8xf32>, vector<2x8x8xf32>, vector<2x8x8xf32>, vector<2x8x8xf32> -> vector<8x8x8xf32>
    "tpu.trace_start"() <{level = 10 : i32, message = "ald,amd->alm"}> : () -> ()
    %cst_4 = arith.constant dense<0.000000e+00> : vector<8x8x8xf32>
    %35 = tpu.matmul %16, %25, %cst_4 {dimension_numbers = #tpu.dot_dimension_numbers<[2], [2], [1], [1], [0, 0, 0, 1, 1, 1], [0], [0]>} : vector<8x8x8xf32>, vector<8x8x8xf32>, vector<8x8x8xf32> -> vector<8x8x8xf32>
    "tpu.trace_stop"() : () -> ()
    %cst_5 = arith.constant dense<0xFF800000> : vector<8x8xf32>
    %36 = vector.multi_reduction <maximumf>, %35, %cst_5 [2] : vector<8x8x8xf32> to vector<8x8xf32>
    %37 = vector.shape_cast %36 : vector<8x8xf32> to vector<8x8x1xf32>
    %38 = vector.broadcast %37 : vector<8x8x1xf32> to vector<8x8x8xf32>
    %39 = arith.subf %35, %38 : vector<8x8x8xf32>
    %40 = math.exp %39 : vector<8x8x8xf32>
    %cst_6 = arith.constant dense<0.000000e+00> : vector<8x8xf32>
    %41 = vector.multi_reduction <add>, %40, %cst_6 [2] : vector<8x8x8xf32> to vector<8x8xf32>
    %42 = vector.shape_cast %41 : vector<8x8xf32> to vector<8x8x1xf32>
    %43 = vector.broadcast %42 : vector<8x8x1xf32> to vector<8x8x8xf32>
    %44 = arith.divf %40, %43 : vector<8x8x8xf32>
    "tpu.trace_start"() <{level = 10 : i32, message = "alm,amd->ald"}> : () -> ()
    %cst_7 = arith.constant dense<0.000000e+00> : vector<8x8x8xf32>
    %45 = tpu.matmul %44, %34, %cst_7 {dimension_numbers = #tpu.dot_dimension_numbers<[2], [1], [1], [2], [0, 0, 0, 1, 1, 2], [0], [0]>} : vector<8x8x8xf32>, vector<8x8x8xf32>, vector<8x8x8xf32> -> vector<8x8x8xf32>
    "tpu.trace_stop"() : () -> ()
    %46 = vector.extract_strided_slice %45 {offsets = [0, 0, 0], sizes = [2, 8, 8], strides = [1, 1, 1]} : vector<8x8x8xf32> to vector<2x8x8xf32>
    %47 = vector.shape_cast %46 : vector<2x8x8xf32> to vector<16x8xf32>
    %48 = vector.extract_strided_slice %45 {offsets = [2, 0, 0], sizes = [2, 8, 8], strides = [1, 1, 1]} : vector<8x8x8xf32> to vector<2x8x8xf32>
    %49 = vector.shape_cast %48 : vector<2x8x8xf32> to vector<16x8xf32>
    %50 = vector.extract_strided_slice %45 {offsets = [4, 0, 0], sizes = [2, 8, 8], strides = [1, 1, 1]} : vector<8x8x8xf32> to vector<2x8x8xf32>
    %51 = vector.shape_cast %50 : vector<2x8x8xf32> to vector<16x8xf32>
    %52 = vector.extract_strided_slice %45 {offsets = [6, 0, 0], sizes = [2, 8, 8], strides = [1, 1, 1]} : vector<8x8x8xf32> to vector<2x8x8xf32>
    %53 = vector.shape_cast %52 : vector<2x8x8xf32> to vector<16x8xf32>
    %54 = tpu.concatenate %47, %49, %51, %53 in 1 : vector<16x8xf32>, vector<16x8xf32>, vector<16x8xf32>, vector<16x8xf32> -> vector<16x32xf32>
    %c0_8 = arith.constant 0 : index
    %c0_9 = arith.constant 0 : index
    %55 = vector.load %arg3[%c0_8, %c0_9] : memref<32x32xf32, #tpu.memory_space<vmem>>, vector<32x32xf32>
    %cst_10 = arith.constant dense<0.000000e+00> : vector<16x32xf32>
    %56 = tpu.matmul %54, %55, %cst_10 {dimension_numbers = #tpu.dot_dimension_numbers<[1], [0], [0], [1], [0, 0, 1, 1], [], []>} : vector<16x32xf32>, vector<32x32xf32>, vector<16x32xf32> -> vector<16x32xf32>
    %c0_11 = arith.constant 0 : index
    %c0_12 = arith.constant 0 : index
    %57 = vector.load %arg4[%c0_11, %c0_12] : memref<1x32xf32, #tpu.memory_space<vmem>>, vector<1x32xf32>
    %58 = vector.broadcast %57 : vector<1x32xf32> to vector<16x32xf32>
    %59 = arith.addf %56, %58 : vector<16x32xf32>
    %60 = arith.addf %0, %59 : vector<16x32xf32>
    %cst_13 = arith.constant dense<0.000000e+00> : vector<16xf32>
    %61 = vector.multi_reduction <add>, %60, %cst_13 [1] : vector<16x32xf32> to vector<16xf32>
    %62 = vector.shape_cast %61 : vector<16xf32> to vector<16x1xf32>
    %cst_14 = arith.constant 3.200000e+01 : f32
    %63 = vector.broadcast %cst_14 : f32 to vector<16x1xf32>
    %64 = arith.divf %62, %63 : vector<16x1xf32>
    %65 = vector.broadcast %64 : vector<16x1xf32> to vector<16x32xf32>
    %66 = arith.subf %60, %65 : vector<16x32xf32>
    %67 = arith.mulf %66, %66 : vector<16x32xf32>
    %cst_15 = arith.constant dense<0.000000e+00> : vector<16xf32>
    %68 = vector.multi_reduction <add>, %67, %cst_15 [1] : vector<16x32xf32> to vector<16xf32>
    %69 = vector.shape_cast %68 : vector<16xf32> to vector<16x1xf32>
    %cst_16 = arith.constant 3.200000e+01 : f32
    %70 = vector.broadcast %cst_16 : f32 to vector<16x1xf32>
    %71 = arith.divf %69, %70 : vector<16x1xf32>
    %72 = vector.broadcast %64 : vector<16x1xf32> to vector<16x32xf32>
    %73 = arith.subf %60, %72 : vector<16x32xf32>
    %cst_17 = arith.constant 9.99999974E-6 : f32
    %74 = vector.broadcast %cst_17 : f32 to vector<16x1xf32>
    %75 = arith.addf %71, %74 : vector<16x1xf32>
    %76 = math.rsqrt %75 : vector<16x1xf32>
    %77 = vector.broadcast %76 : vector<16x1xf32> to vector<16x32xf32>
    %78 = arith.mulf %73, %77 : vector<16x32xf32>
    %c0_18 = arith.constant 0 : index
    %c0_19 = arith.constant 0 : index
    %79 = vector.load %arg5[%c0_18, %c0_19] : memref<1x32xf32, #tpu.memory_space<vmem>>, vector<1x32xf32>
    %80 = vector.broadcast %79 : vector<1x32xf32> to vector<16x32xf32>
    %81 = arith.mulf %78, %80 : vector<16x32xf32>
    %c0_20 = arith.constant 0 : index
    %c0_21 = arith.constant 0 : index
    %82 = vector.load %arg6[%c0_20, %c0_21] : memref<1x32xf32, #tpu.memory_space<vmem>>, vector<1x32xf32>
    %83 = vector.broadcast %82 : vector<1x32xf32> to vector<16x32xf32>
    %84 = arith.addf %81, %83 : vector<16x32xf32>
    %c0_22 = arith.constant 0 : index
    %c0_23 = arith.constant 0 : index
    %85 = vector.load %arg7[%c0_22, %c0_23] : memref<16x32xf32, #tpu.memory_space<vmem>>, vector<16x32xf32>
    tpu.vector_store %arg7[%c0_22, %c0_23], %84 {strides = array<i32>} : memref<16x32xf32, #tpu.memory_space<vmem>>, vector<16x32xf32>,
    return
  }
  func.func @transform_0(%arg0: i32) -> (i32, i32) {
    %c0_i32 = arith.constant 0 : i32
    %c0_i32_0 = arith.constant 0 : i32
    %c0_i32_1 = arith.constant 0 : i32
    return %c0_i32, %c0_i32_0 : i32, i32
  }
  func.func @transform_1(%arg0: i32) -> (i32, i32) {
    %c0_i32 = arith.constant 0 : i32
    %c0_i32_0 = arith.constant 0 : i32
    %c0_i32_1 = arith.constant 0 : i32
    return %c0_i32, %c0_i32_0 : i32, i32
  }
  func.func @transform_2(%arg0: i32) -> (i32, i32) {
    %c0_i32 = arith.constant 0 : i32
    %c0_i32_0 = arith.constant 0 : i32
    %c0_i32_1 = arith.constant 0 : i32
    return %c0_i32, %c0_i32_0 : i32, i32
  }
  func.func @transform_3(%arg0: i32) -> (i32, i32) {
    %c0_i32 = arith.constant 0 : i32
    %c0_i32_0 = arith.constant 0 : i32
    %c0_i32_1 = arith.constant 0 : i32
    return %c0_i32, %c0_i32_0 : i32, i32
  }
  func.func @transform_4(%arg0: i32) -> (i32, i32) {
    %c0_i32 = arith.constant 0 : i32
    %c0_i32_0 = arith.constant 0 : i32
    %c0_i32_1 = arith.constant 0 : i32
    return %c0_i32, %c0_i32_0 : i32, i32
  }
  func.func @transform_5(%arg0: i32) -> (i32, i32) {
    %c0_i32 = arith.constant 0 : i32
    %c0_i32_0 = arith.constant 0 : i32
    %c0_i32_1 = arith.constant 0 : i32
    return %c0_i32, %c0_i32_0 : i32, i32
  }
  func.func @transform_6(%arg0: i32) -> (i32, i32) {
    %c0_i32 = arith.constant 0 : i32
    %c0_i32_0 = arith.constant 0 : i32
    %c0_i32_1 = arith.constant 0 : i32
    return %c0_i32, %c0_i32_0 : i32, i32
  }
}

</mosaic_0001>

<bundles_post_ra>
// kernel: mhsa_forward.1
= control target key start
LH: loop header
LB: loop body
LE: loop exit
PB: predicated region body
PF: predicated region fallthrough
CT: control target
= control target key end

     0   :  { %11 = vsyncpa [#allocation3], 0  ;;  %s2266_s0 = inlined_call_operand.hbm [shape: f32[16,32], index: 0, kind: input, shape index: {}]   ;;  %s2267_s1 = inlined_call_operand.hbm [shape: f32[32,96], index: 1, kind: input, shape index: {}]   ;;  %s2268_s2 = inlined_call_operand.hbm [shape: f32[32,32], index: 2, kind: input, shape index: {}]   ;;  %s2269_s3 = inlined_call_operand.vmem [shape: f32[1,32], index: 3, kind: input, shape index: {}]   ;;  %s2270_s4 = inlined_call_operand.vmem [shape: f32[1,32], index: 4, kind: input, shape index: {}]   ;;  %s2271_s5 = inlined_call_operand.vmem [shape: f32[1,32], index: 5, kind: input, shape index: {}]   ;;  %s2272_s6 = inlined_call_operand.hbm [shape: f32[16,32], index: 6, kind: output, shape index: {}]  }
   0x1   :  { %12 = vsyncpa [#allocation6], 0 }
   0x2   :  { %13 = vsyncpa [#allocation4], 0  ;;  %s1993_s21 = smov [#allocation5]   ;;  %s1994_s23 = smov [#allocation2]  }
   0x3   :  { %s31_s22 = sshll.u32 %s1993_s21, 4  ;;  %s19_s24 = sshll.u32 %s1994_s23, 4  ;;  %s32_s22 = int_to_ptr.vmem [resolvable:$true] %s31_s22  ;;  %s20_s24 = int_to_ptr.vmem [resolvable:$true] %s19_s24 }
   0x4   :  { %s1915_s25 = scalar_lea.vmem %s32_s22, 512  ;;  %p1920_p1 = scmp.lt.s32.totalorder %s32_s22, %s32_s22 }
   0x5   :  { %p1916_p0 = scmp.ne.s32.totalorder %s32_s22, %s1915_s25  ;;  %p1921_p2 = scmp.lt.s32.totalorder %s1915_s25, %s1915_s25 }
   0x7   :  { %p1922_p3 = por %p1921_p2, %p1920_p1 }
   0x9   :  { %p1923_p4 = pnand %p1922_p3, %p1916_p0 }
   0xb   :  { %1926 = shalt.err (!%p1923_p4)
}
   0xc   :  { %s1995_s26 = smov 128   ;;  %s1996_s27 = smov 8  }
   0xd   :  { %37 = dma.hbm_to_vmem [thread:$0]  %s2267_s1, 512, %s32_s22, [#allocation6], %s1995_s26, %s1995_s26, %s1996_s27  }
   0xe   :  { %s1935_s30 = scalar_lea.vmem %s20_s24, 256  ;;  %p1940_p6 = scmp.lt.s32.totalorder %s20_s24, %s20_s24 }
   0xf   :  { %p1936_p5 = scmp.ne.s32.totalorder %s20_s24, %s1935_s30  ;;  %p1941_p7 = scmp.lt.s32.totalorder %s1935_s30, %s1935_s30 }
  0x11   :  { %p1942_p8 = por %p1941_p7, %p1940_p6 }
  0x13   :  { %p1943_p9 = pnand %p1942_p8, %p1936_p5 }
  0x15   :  { %1946 = shalt.err (!%p1943_p9)
}
  0x16   :  { %25 = dma.hbm_to_vmem [thread:$0]  %s2266_s0, 256, %s20_s24, [#allocation3], %s1995_s26, %s1995_s26, %s1996_s27  }
  0x17   :  { %s1997_s9 = smov [#allocation7]  }
  0x18   :  { %s43_s10 = sshll.u32 %s1997_s9, 4  ;;  %s44_s10 = int_to_ptr.vmem [resolvable:$true] %s43_s10 }
  0x19   :  { %s1955_s11 = scalar_lea.vmem %s44_s10, 512  ;;  %p1960_p11 = scmp.lt.s32.totalorder %s44_s10, %s44_s10 }
  0x1a   :  { %p1956_p10 = scmp.ne.s32.totalorder %s44_s10, %s1955_s11  ;;  %p1961_p12 = scmp.lt.s32.totalorder %s1955_s11, %s1955_s11 }
  0x1c   :  { %p1962_p13 = por %p1961_p12, %p1960_p11 }
  0x1e   :  { %p1963_p0 = pnand %p1962_p13, %p1956_p10 }
  0x20   :  { %1966 = shalt.err (!%p1963_p0)
}
  0x21   :  { %49 = dma.hbm_to_vmem [thread:$0]  %s2268_s2, 512, %s44_s10, [#allocation6], %s1995_s26, %s1995_s26, %s1996_s27  }
  0x22   :  { %1987 = dma.done.wait [#allocation3], 256  }
  0x23   :  { %1988 = vsyncadd [#allocation3], 4294967040 }
  0x24   :  { %1989 = dma.done.wait [#allocation6], 1024  }
  0x25   :  { %1990 = vsyncadd [#allocation6], 4294966272  ;;  %vm71_vm0 = vcmask 261120   ;;  %v70_v0 = vld [vmem:[#allocation5 + $0x18] sm:$0xff]  ;;  %v69_v1 = vld [vmem:[#allocation5 + $0x10] sm:$0xff]  ;;  %v1998_v6 = vmov 0.0  }
  0x26   :  { %1754 = vmatprep.subr.mxu0 %v70_v0  ;;  %v2061_v2 = vld [vmem:[#allocation2] sm:$0xff]  ;;  %v68_v3 = vld [vmem:[#allocation5 + $0x8] sm:$0xff]  ;;  %v67_v4 = vld [vmem:[#allocation5] sm:$0xff]  ;;  %1765 = vmatprep.subr.mxu1 %v1998_v6  ;;  %s1999_s0 = smov 112   ;;  %s2000_s2 = smov 120   ;;  %vm2001_vm1 = vmmov 0  }
  0x27   :  { %1755 = vmatpush3.msra.mxu0 %v70_v0  ;;  %1762 = vmatprep.mubr.msk.f32.mxu0 %vm71_vm0, %v2061_v2  ;;  %v2065_v5 = vld [vmem:[#allocation2 + $0x8] sm:$0xff]  ;;  %s2002_s13 = smov 104   ;;  %s2003_s14 = smov 96   ;;  %vm185_vm2 = vcmask 64512   ;;  %vm1514_vm3 = vcmask 130048   ;;  %vm1517_vm4 = vcmask 195584  }
  0x28   :  { %1756 = vmatprep.subr.mxu0 %v69_v1  ;;  %1767 = vmatprep.mubr.msk.f32.mxu1 %vm2001_vm1, %v1998_v6  ;;  %s2004_s15 = smov 64   ;;  %s2005_s16 = smov 16  }
  0x29   :  { %1757 = vmatpush3.msra.mxu0 %v69_v1  ;;  %s2006_s17 = smov 24   ;;  %s2007_s23 = smov [#allocation8]  }
  0x2a   :  { %1758 = vmatprep.subr.mxu0 %v68_v3  ;;  %s1666_s24 = sshll.u32 %s2007_s23, 4  ;;  %s1667_s24 = int_to_ptr.vmem [resolvable:$true] %s1666_s24 }
  0x2b   :  { %1759 = vmatpush3.msra.mxu0 %v68_v3  ;;  %s1967_s25 = scalar_lea.vmem %s1667_s24, 256  ;;  %p1972_p2 = scmp.lt.s32.totalorder %s1667_s24, %s1667_s24 }
  0x2c   :  { %1760 = vmatprep.subr.mxu0 %v67_v4  ;;  %p1968_p1 = scmp.ne.s32.totalorder %s1667_s24, %s1967_s25  ;;  %p1973_p3 = scmp.lt.s32.totalorder %s1967_s25, %s1967_s25 }
  0x2d   :  { %1761 = vmatpush3.msra.mxu0 %v67_v4 }
  0x2e   :  { %1763 = vmatmul.mubr.msk.f32.vlgmr.msra.gmra.mxu0 %vm71_vm0, %v2065_v5  ;;  %1785 = vmatprep.subr.mxu0 %v1998_v6  ;;  %p1974_p4 = por %p1973_p3, %p1972_p2 }
  0x2f   :  { %1787 = vmatprep.mubr.msk.f32.mxu0 %vm2001_vm1, %v1998_v6 }
  0x30   :  { %p1975_p5 = pnand %p1974_p4, %p1968_p1 }
  0xee   :  { %v2071_v7 = vpop.f32.mrf.mxu0 }
  0xef   :  { %v154_v9 = vmul.f32 0.35355338, %v2071_v7 }
  0xf0   :  { %v2073_v8 = vpop.f32.mrf.mxu0 }
  0xf1   :  { %175 = vrot.lane.b32.xlu1 %v2073_v8, %s1999_s0  ;;  %171 = vrot.lane.b32.xlu0 %v2073_v8, %s2000_s2  ;;  %v153_v10 = vmul.f32 0.35355338, %v2073_v8 }
  0xf5   :  { %177 = vrot.lane.b32.xlu1 %v2071_v7, %s1999_s0  ;;  %173 = vrot.lane.b32.xlu0 %v2071_v7, %s2000_s2 }
  0xf9   :  { %181 = vrot.lane.b32.xlu1 %v2071_v7, %s2002_s13  ;;  %179 = vrot.lane.b32.xlu0 %v2073_v8, %s2002_s13 }
  0xfd   :  { %260 = vrot.lane.b32.xlu1 %v2071_v7, %s2003_s14  ;;  %183 = vrot.lane.b32.xlu0 %v2073_v8, %s2003_s14 }
 0x101   :  { %159 = vrot.lane.b32.xlu1 %v154_v9, %s2000_s2 }
 0x105   :  { %157 = vrot.lane.b32.xlu1 %v153_v10, %s2000_s2 }
 0x163   :  { %v2095_v11 = vpop.permute.xlu1 %175  ;;  %v2097_v12 = vpop.permute.xlu0 %171 }
 0x167   :  { %v2099_v13 = vpop.permute.xlu1 %177  ;;  %v2101_v14 = vpop.permute.xlu0 %173 }
 0x168   :  { %412 = vrot.lane.b32.xlu0 %v2101_v14, %s2003_s14  ;;  %564 = vrot.lane.b32.xlu1 %v2099_v13, %s2003_s14 }
 0x16b   :  { %v2107_v15 = vpop.permute.xlu0 %179  ;;  %v2112_v16 = vpop.permute.xlu1 %181 }
 0x16c   :  { %336 = vrot.lane.b32.xlu0 %v2097_v12, %s2003_s14  ;;  %163 = vrot.lane.b32.xlu1 %v154_v9, %s1999_s0 }
 0x16f   :  { %v184_v17 = vpop.permute.xlu0 %183  ;;  %v261_v18 = vpop.permute.xlu1 %260 }
 0x170   :  { %1766 = vmatpush3.xpose.msk.msra.mxu1 %vm185_vm2, %v184_v17  ;;  %161 = vrot.lane.b32.xlu0 %v153_v10, %s1999_s0 }
 0x171   :  { %716 = vrot.lane.b32.xlu1 %v2112_v16, %s2003_s14  ;;  %1770 = vmatprep.subr.mxu1 %v1998_v6 }
 0x173   :  { %1768 = vmatmul.mubr.msk.f32.vlgmr.msra.gmra.mxu1 %vm185_vm2, %v153_v10  ;;  %v160_v19 = vpop.permute.xlu1 %159 }
 0x174   :  { %488 = vrot.lane.b32.xlu0 %v2095_v11, %s2003_s14  ;;  %1771 = vmatpush3.xpose.msk.msra.mxu1 %vm185_vm2, %v261_v18 }
 0x175   :  { %167 = vrot.lane.b32.xlu1 %v154_v9, %s2002_s13  ;;  %1772 = vmatprep.mubr.msk.f32.mxu1 %vm2001_vm1, %v1998_v6 }
 0x176   :  { %1775 = vmatprep.subr.mxu1 %v1998_v6 }
 0x177   :  { %1773 = vmatmul.mubr.msk.f32.vlgmr.msra.gmra.mxu1 %vm185_vm2, %v154_v9  ;;  %v158_v20 = vpop.permute.xlu1 %157 }
 0x178   :  { %640 = vrot.lane.b32.xlu0 %v2107_v15, %s2003_s14  ;;  %1777 = vmatprep.mubr.msk.f32.mxu1 %vm2001_vm1, %v1998_v6 }
 0x17c   :  { %165 = vrot.lane.b32.xlu0 %v153_v10, %s2002_s13 }
 0x1da   :  { %v413_v21 = vpop.permute.xlu0 %412  ;;  %v565_v22 = vpop.permute.xlu1 %564 }
 0x1de   :  { %v337_v23 = vpop.permute.xlu0 %336  ;;  %v164_v24 = vpop.permute.xlu1 %163 }
 0x1df   :  { %1776 = vmatpush3.xpose.msk.msra.mxu1 %vm185_vm2, %v337_v23 }
 0x1e0   :  { %1780 = vmatprep.subr.mxu1 %v1998_v6 }
 0x1e2   :  { %v162_v25 = vpop.permute.xlu0 %161  ;;  %1778 = vmatmul.mubr.msk.f32.vlgmr.msra.gmra.mxu1 %vm185_vm2, %v158_v20 }
 0x1e3   :  { %1781 = vmatpush3.xpose.msk.msra.mxu1 %vm185_vm2, %v413_v21  ;;  %1782 = vmatprep.mubr.msk.f32.mxu1 %vm2001_vm1, %v1998_v6  ;;  %v717_v27 = vpop.permute.xlu1 %716 }
 0x1e4   :  { %1790 = vmatprep.subr.mxu1 %v1998_v6 }
 0x1e6   :  { %v489_v26 = vpop.permute.xlu0 %488  ;;  %1783 = vmatmul.mubr.msk.f32.vlgmr.msra.gmra.mxu1 %vm185_vm2, %v160_v19 }
 0x1e7   :  { %1786 = vmatpush3.xpose.msk.msra.mxu0 %vm185_vm2, %v489_v26  ;;  %1791 = vmatpush3.xpose.msk.msra.mxu1 %vm185_vm2, %v565_v22  ;;  %v168_v29 = vpop.permute.xlu1 %167 }
 0x1e8   :  { %1792 = vmatprep.mubr.msk.f32.mxu1 %vm2001_vm1, %v1998_v6  ;;  %1795 = vmatprep.subr.mxu0 %v1998_v6 }
 0x1e9   :  { %1800 = vmatprep.subr.mxu1 %v1998_v6 }
 0x1ea   :  { %1788 = vmatmul.mubr.msk.f32.vlgmr.msra.gmra.mxu0 %vm185_vm2, %v162_v25  ;;  %v641_v28 = vpop.permute.xlu0 %640  ;;  %1793 = vmatmul.mubr.msk.f32.vlgmr.msra.gmra.mxu1 %vm185_vm2, %v164_v24 }
 0x1eb   :  { %1796 = vmatpush3.xpose.msk.msra.mxu0 %vm185_vm2, %v641_v28  ;;  %1801 = vmatpush3.xpose.msk.msra.mxu1 %vm185_vm2, %v717_v27 }
 0x1ec   :  { %1802 = vmatprep.mubr.msk.f32.mxu1 %vm2001_vm1, %v1998_v6  ;;  %1797 = vmatprep.mubr.msk.f32.mxu0 %vm2001_vm1, %v1998_v6 }
 0x1ed   :  { %1810 = vmatprep.subr.mxu1 %v1998_v6  ;;  %1805 = vmatprep.subr.mxu0 %v1998_v6 }
 0x1ee   :  { %v166_v30 = vpop.permute.xlu0 %165  ;;  %1803 = vmatmul.mubr.msk.f32.vlgmr.msra.gmra.mxu1 %vm185_vm2, %v168_v29 }
 0x1ef   :  { %1798 = vmatmul.mubr.msk.f32.vlgmr.msra.gmra.mxu0 %vm185_vm2, %v166_v30  ;;  %1812 = vmatprep.mubr.msk.f32.mxu1 %vm2001_vm1, %v1998_v6 }
 0x1f0   :  { %1807 = vmatprep.mubr.msk.f32.mxu0 %vm2001_vm1, %v1998_v6 }
 0x233   :  { %v256_v31 = vpop.f32.mrf.mxu1 }
 0x234   :  { %v792_v32 = vsel %vm185_vm2, %v256_v31, -inf }
 0x235   :  { %793 = vmax.xlane.f32.xlu0 %v792_v32  ;;  %v1769_v33 = vpop.f32.mrf.mxu1 }
 0x237   :  { %v332_v34 = vpop.f32.mrf.mxu1 }
 0x238   :  { %v795_v35 = vsel %vm185_vm2, %v332_v34, -inf }
 0x239   :  { %796 = vmax.xlane.f32.xlu1 %v795_v35  ;;  %v1774_v36 = vpop.f32.mrf.mxu1 }
 0x2a2   :  { %v408_v37 = vpop.f32.mrf.mxu1 }
 0x2a3   :  { %v798_v38 = vsel %vm185_vm2, %v408_v37, -inf }
 0x2a4   :  { %799 = vmax.xlane.f32.xlu0 %v798_v38  ;;  %v1779_v39 = vpop.f32.mrf.mxu1 }
 0x2a6   :  { %v484_v40 = vpop.f32.mrf.mxu1 }
 0x2a7   :  { %v801_v41 = vsel %vm185_vm2, %v484_v40, -inf }
 0x2a8   :  { %802 = vmax.xlane.f32.xlu0 %v801_v41  ;;  %v1784_v42 = vpop.f32.mrf.mxu1 }
 0x2aa   :  { %v560_v43 = vpop.f32.mrf.mxu0  ;;  %v636_v44 = vpop.f32.mrf.mxu1 }
 0x2ab   :  { %v804_v45 = vsel %vm185_vm2, %v560_v43, -inf  ;;  %v807_v46 = vsel %vm185_vm2, %v636_v44, -inf }
 0x2ac   :  { %v1789_v47 = vpop.f32.mrf.mxu0  ;;  %805 = vmax.xlane.f32.xlu1 %v804_v45  ;;  %808 = vmax.xlane.f32.xlu0 %v807_v46  ;;  %v1794_v48 = vpop.f32.mrf.mxu1 }
 0x2ae   :  { %v788_v49 = vpop.f32.mrf.mxu1 }
 0x2af   :  { %v712_v50 = vpop.f32.mrf.mxu0  ;;  %v813_v51 = vsel %vm185_vm2, %v788_v49, -inf }
 0x2b0   :  { %814 = vmax.xlane.f32.xlu0 %v813_v51  ;;  %v1804_v52 = vpop.f32.mrf.mxu1  ;;  %v810_v53 = vsel %vm185_vm2, %v712_v50, -inf }
 0x2b1   :  { %v1799_v54 = vpop.f32.mrf.mxu0  ;;  %811 = vmax.xlane.f32.xlu1 %v810_v53 }
 0x2be   :  { %v794_v58 = vpop.xlane.xlu0 %793 }
 0x2bf   :  { %v816_v59 = vsub.f32 %v256_v31, %v794_v58 }
 0x2c1   :  { %v824_v60 = vmul.f32 1.442695, %v816_v59 }
 0x2c2   :  { %880 = vrot.lane.b32.xlu1 %v2073_v8, %s2004_s15  ;;  %v797_v55 = vpop.xlane.xlu1 %796 }
 0x2c3   :  { %v817_v56 = vsub.f32 %v332_v34, %v797_v55 }
 0x2c5   :  { %v826_v57 = vmul.f32 1.442695, %v817_v56 }
 0x2c6   :  { %1032 = vrot.lane.b32.xlu1 %v2097_v12, %s2004_s15  ;;  %956 = vrot.lane.b32.xlu0 %v2071_v7, %s2004_s15 }
 0x2c7   :  { %1871 = vpow2.f32 %v826_v57 }
 0x2c8   :  { %1873 = vpow2.f32 %v824_v60 }
 0x2ca   :  { %1108 = vrot.lane.b32.xlu1 %v2101_v14, %s2004_s15  ;;  %1184 = vrot.lane.b32.xlu0 %v2095_v11, %s2004_s15 }
 0x2ce   :  { %1260 = vrot.lane.b32.xlu1 %v2099_v13, %s2004_s15 }
 0x2d4   :  { %v2183_v61 = vpop.eup %1871 }
 0x2d5   :  { %v843_v62 = vsel %vm185_vm2, %v2183_v61, 0.0  ;;  %v2187_v63 = vpop.eup %1873 }
 0x2d6   :  { %v840_v0 = vsel %vm185_vm2, %v2187_v63, 0.0 }
 0x2e9   :  { %844 = vadd.xlane.f32.xlu0 %v843_v62 }
 0x2f2   :  { %841 = vadd.xlane.f32.xlu1 %v840_v0 }
 0x32d   :  { %v800_v1 = vpop.xlane.xlu0 %799 }
 0x32e   :  { %v818_v3 = vsub.f32 %v408_v37, %v800_v1 }
 0x330   :  { %v828_v4 = vmul.f32 1.442695, %v818_v3 }
 0x331   :  { %v803_v7 = vpop.xlane.xlu0 %802 }
 0x332   :  { %1875 = vpow2.f32 %v828_v4  ;;  %v819_v8 = vsub.f32 %v484_v40, %v803_v7 }
 0x334   :  { %v830_v9 = vmul.f32 1.442695, %v819_v8 }
 0x335   :  { %v806_v10 = vpop.xlane.xlu1 %805  ;;  %v809_v11 = vpop.xlane.xlu0 %808 }
 0x336   :  { %1877 = vpow2.f32 %v830_v9  ;;  %v820_v12 = vsub.f32 %v560_v43, %v806_v10  ;;  %v821_v13 = vsub.f32 %v636_v44, %v809_v11  ;;  %v1523_v9 = vld [vmem:[#allocation7 + $0x18] sm:$0xff]  ;;  %v1522_v10 = vld [vmem:[#allocation7 + $0x10] sm:$0xff]  ;;  %v1521_v11 = vld [vmem:[#allocation7 + $0x8] sm:$0xff] }
 0x338   :  { %v832_v14 = vmul.f32 1.442695, %v820_v12  ;;  %v834_v17 = vmul.f32 1.442695, %v821_v13  ;;  %v1520_v13 = vld [vmem:[#allocation7] sm:$0xff] }
 0x339   :  { %v815_v18 = vpop.xlane.xlu0 %814 }
 0x33a   :  { %1879 = vpow2.f32 %v832_v14  ;;  %v823_v19 = vsub.f32 %v788_v49, %v815_v18  ;;  %v812_v20 = vpop.xlane.xlu1 %811 }
 0x33b   :  { %1881 = vpow2.f32 %v834_v17  ;;  %v822_v21 = vsub.f32 %v712_v50, %v812_v20 }
 0x33c   :  { %v838_v22 = vmul.f32 1.442695, %v823_v19 }
 0x33d   :  { %v836_v23 = vmul.f32 1.442695, %v822_v21  ;;  %v957_v24 = vpop.permute.xlu0 %956 }
 0x33e   :  { %1883 = vpow2.f32 %v838_v22  ;;  %v881_v25 = vpop.permute.xlu1 %880  ;;  %1811 = vmatpush3.msra.mxu1 %v957_v24 }
 0x33f   :  { %v1876_v26 = vpop.eup %1875  ;;  %1885 = vpow2.f32 %v836_v23  ;;  %1806 = vmatpush3.msra.mxu0 %v881_v25  ;;  %1820 = vmatprep.subr.mxu1 %v1998_v6 }
 0x340   :  { %v846_v27 = vsel %vm185_vm2, %v1876_v26, 0.0  ;;  %1815 = vmatprep.subr.mxu0 %v1998_v6 }
 0x341   :  { %847 = vadd.xlane.f32.xlu1 %v846_v27  ;;  %v1185_v39 = vpop.permute.xlu0 %1184 }
 0x342   :  { %v1033_v38 = vpop.permute.xlu1 %1032 }
 0x343   :  { %v1878_v28 = vpop.eup %1877 }
 0x344   :  { %v849_v29 = vsel %vm185_vm2, %v1878_v28, 0.0 }
 0x345   :  { %850 = vadd.xlane.f32.xlu0 %v849_v29 }
 0x346   :  { %v1109_v40 = vpop.permute.xlu1 %1108 }
 0x347   :  { %v1880_v30 = vpop.eup %1879 }
 0x348   :  { %v1882_v31 = vpop.eup %1881  ;;  %v852_v32 = vsel %vm185_vm2, %v1880_v30, 0.0 }
 0x349   :  { %853 = vadd.xlane.f32.xlu1 %v852_v32  ;;  %v855_v33 = vsel %vm185_vm2, %v1882_v31, 0.0 }
 0x34a   :  { %856 = vadd.xlane.f32.xlu0 %v855_v33  ;;  %v1261_v42 = vpop.permute.xlu1 %1260 }
 0x34b   :  { %v2197_v34 = vpop.eup %1883 }
 0x34c   :  { %v2199_v35 = vpop.eup %1885  ;;  %v861_v36 = vsel %vm185_vm2, %v2197_v34, 0.0 }
 0x34d   :  { %v858_v37 = vsel %vm185_vm2, %v2199_v35, 0.0 }
 0x34e   :  { %862 = vadd.xlane.f32.xlu0 %v861_v36  ;;  %859 = vadd.xlane.f32.xlu1 %v858_v37 }
 0x35f   :  { %1412 = vrot.lane.b32.xlu1 %v2112_v16, %s2004_s15 }
 0x364   :  { %1336 = vrot.lane.b32.xlu0 %v2107_v15, %s2004_s15 }
 0x372   :  { %v845_v41 = vpop.xlane.xlu0 %844 }
 0x373   :  { %1887 = vrcp.f32 %v845_v41 }
 0x37b   :  { %v842_v43 = vpop.xlane.xlu1 %841 }
 0x37c   :  { %1889 = vrcp.f32 %v842_v43 }
 0x380   :  { %v1888_v44 = vpop.eup %1887 }
 0x381   :  { %v867_v45 = vmul.f32 %v1888_v44, %v2183_v61 }
 0x383   :  { %1813 = vmatmul.mubr.msk.f32.vlgmr.msra.gmra.mxu1 %vm185_vm2, %v867_v45 }
 0x384   :  { %1821 = vmatpush3.msra.mxu1 %v1109_v40  ;;  %1822 = vmatprep.mubr.msk.f32.mxu1 %vm2001_vm1, %v1998_v6 }
 0x385   :  { %1830 = vmatprep.subr.mxu1 %v1998_v6 }
 0x389   :  { %v1890_v15 = vpop.eup %1889 }
 0x38a   :  { %v865_v16 = vmul.f32 %v1890_v15, %v2187_v63 }
 0x38c   :  { %1808 = vmatmul.mubr.msk.f32.vlgmr.msra.gmra.mxu0 %vm185_vm2, %v865_v16 }
 0x38d   :  { %1816 = vmatpush3.msra.mxu0 %v1033_v38  ;;  %1817 = vmatprep.mubr.msk.f32.mxu0 %vm2001_vm1, %v1998_v6  ;;  %v1705_v38 = vld [vmem:[%s2269_s3] ss:$0 sm:$0xff] }
 0x38e   :  { %1825 = vmatprep.subr.mxu0 %v1998_v6 }
 0x3ca   :  { %v848_v46 = vpop.xlane.xlu1 %847 }
 0x3cb   :  { %1891 = vrcp.f32 %v848_v46 }
 0x3ce   :  { %v851_v47 = vpop.xlane.xlu0 %850 }
 0x3cf   :  { %1893 = vrcp.f32 %v851_v47 }
 0x3d2   :  { %v854_v48 = vpop.xlane.xlu1 %853 }
 0x3d3   :  { %1895 = vrcp.f32 %v854_v48  ;;  %v857_v49 = vpop.xlane.xlu0 %856 }
 0x3d4   :  { %1897 = vrcp.f32 %v857_v49 }
 0x3d7   :  { %v863_v50 = vpop.xlane.xlu0 %862  ;;  %v860_v51 = vpop.xlane.xlu1 %859 }
 0x3d8   :  { %v1892_v52 = vpop.eup %1891  ;;  %1899 = vrcp.f32 %v863_v50 }
 0x3d9   :  { %1901 = vrcp.f32 %v860_v51  ;;  %v869_v53 = vmul.f32 %v1892_v52, %v1876_v26 }
 0x3db   :  { %1818 = vmatmul.mubr.msk.f32.vlgmr.msra.gmra.mxu0 %vm185_vm2, %v869_v53  ;;  %v1337_v60 = vpop.permute.xlu0 %1336  ;;  %v1413_v61 = vpop.permute.xlu1 %1412 }
 0x3dc   :  { %v1894_v54 = vpop.eup %1893  ;;  %1826 = vmatpush3.msra.mxu0 %v1185_v39  ;;  %1827 = vmatprep.mubr.msk.f32.mxu0 %vm2001_vm1, %v1998_v6 }
 0x3dd   :  { %v871_v55 = vmul.f32 %v1894_v54, %v1878_v28  ;;  %1835 = vmatprep.subr.mxu0 %v1998_v6 }
 0x3df   :  { %1823 = vmatmul.mubr.msk.f32.vlgmr.msra.gmra.mxu1 %vm185_vm2, %v871_v55 }
 0x3e0   :  { %v1896_v56 = vpop.eup %1895  ;;  %1831 = vmatpush3.msra.mxu1 %v1261_v42  ;;  %1832 = vmatprep.mubr.msk.f32.mxu1 %vm2001_vm1, %v1998_v6 }
 0x3e1   :  { %v1898_v57 = vpop.eup %1897  ;;  %1840 = vmatprep.subr.mxu1 %v1998_v6  ;;  %v873_v58 = vmul.f32 %v1896_v56, %v1880_v30 }
 0x3e2   :  { %v875_v59 = vmul.f32 %v1898_v57, %v1882_v31 }
 0x3e3   :  { %1828 = vmatmul.mubr.msk.f32.vlgmr.msra.gmra.mxu0 %vm185_vm2, %v873_v58 }
 0x3e4   :  { %1833 = vmatmul.mubr.msk.f32.vlgmr.msra.gmra.mxu1 %vm185_vm2, %v875_v59  ;;  %1836 = vmatpush3.msra.mxu0 %v1337_v60  ;;  %v1708_v60 = vld [vmem:[%s2270_s4] ss:$0 sm:$0xff] }
 0x3e5   :  { %v1900_v62 = vpop.eup %1899  ;;  %1841 = vmatpush3.msra.mxu1 %v1413_v61  ;;  %1842 = vmatprep.mubr.msk.f32.mxu1 %vm2001_vm1, %v1998_v6 }
 0x3e6   :  { %v1902_v63 = vpop.eup %1901  ;;  %1837 = vmatprep.mubr.msk.f32.mxu0 %vm2001_vm1, %v1998_v6  ;;  %v879_v0 = vmul.f32 %v1900_v62, %v2197_v34  ;;  %1845 = vmatprep.subr.mxu0 %v1523_v9  ;;  %v1709_v62 = vld [vmem:[%s2271_s5] ss:$0 sm:$0xff] }
 0x3e7   :  { %v877_v1 = vmul.f32 %v1902_v63, %v2199_v35 }
 0x3e8   :  { %1843 = vmatmul.mubr.msk.f32.vlgmr.msra.gmra.mxu1 %vm185_vm2, %v879_v0 }
 0x3e9   :  { %1838 = vmatmul.mubr.msk.f32.vlgmr.msra.gmra.mxu0 %vm185_vm2, %v877_v1 }
 0x3ea   :  { %1846 = vmatpush3.msra.mxu0 %v1523_v9 }
 0x3eb   :  { %1847 = vmatprep.subr.mxu0 %v1522_v10 }
 0x3ec   :  { %1848 = vmatpush3.msra.mxu0 %v1522_v10 }
 0x3ed   :  { %1849 = vmatprep.subr.mxu0 %v1521_v11 }
 0x3ee   :  { %1850 = vmatpush3.msra.mxu0 %v1521_v11 }
 0x3ef   :  { %1851 = vmatprep.subr.mxu0 %v1520_v13 }
 0x3f0   :  { %1852 = vmatpush3.msra.mxu0 %v1520_v13 }
 0x443   :  { %v1028_v3 = vpop.f32.mrf.mxu1 }
 0x445   :  { %v1814_v4 = vpop.f32.mrf.mxu1 }
 0x44c   :  { %v952_v7 = vpop.f32.mrf.mxu0 }
 0x44e   :  { %v1809_v8 = vpop.f32.mrf.mxu0 }
 0x49b   :  { %v1104_v6 = vpop.f32.mrf.mxu0 }
 0x49c   :  { %1490 = vrot.lane.b32.xlu0 %v1104_v6, %s1996_s27 }
 0x49d   :  { %v1819_v12 = vpop.f32.mrf.mxu0 }
 0x49f   :  { %v1180_v14 = vpop.f32.mrf.mxu1 }
 0x4a0   :  { %1492 = vrot.lane.b32.xlu1 %v1180_v14, %s1996_s27 }
 0x4a1   :  { %v1824_v17 = vpop.f32.mrf.mxu1 }
 0x4a3   :  { %v1256_v18 = vpop.f32.mrf.mxu0 }
 0x4a4   :  { %v1332_v19 = vpop.f32.mrf.mxu1  ;;  %1498 = vrot.lane.b32.xlu0 %v1256_v18, %s2005_s16 }
 0x4a5   :  { %1500 = vrot.lane.b32.xlu1 %v1332_v19, %s2005_s16  ;;  %v1829_v20 = vpop.f32.mrf.mxu0 }
 0x4a6   :  { %v1834_v21 = vpop.f32.mrf.mxu1 }
 0x4a8   :  { %v1484_v22 = vpop.f32.mrf.mxu1 }
 0x4a9   :  { %v1408_v23 = vpop.f32.mrf.mxu0  ;;  %1508 = vrot.lane.b32.xlu1 %v1484_v22, %s2006_s17 }
 0x4aa   :  { %1506 = vrot.lane.b32.xlu0 %v1408_v23, %s2006_s17  ;;  %v1844_v24 = vpop.f32.mrf.mxu1 }
 0x4ab   :  { %v1839_v25 = vpop.f32.mrf.mxu0 }
 0x50e   :  { %v1491_v26 = vpop.permute.xlu0 %1490 }
 0x50f   :  { %v1512_v30 = vsel %vm185_vm2, %v952_v7, %v1491_v26 }
 0x512   :  { %v1493_v27 = vpop.permute.xlu1 %1492 }
 0x513   :  { %v1513_v32 = vsel %vm185_vm2, %v1028_v3, %v1493_v27 }
 0x516   :  { %v1499_v28 = vpop.permute.xlu0 %1498 }
 0x517   :  { %v1501_v29 = vpop.permute.xlu1 %1500  ;;  %v1515_v33 = vsel %vm1514_vm3, %v1512_v30, %v1499_v28 }
 0x518   :  { %v1516_v35 = vsel %vm1514_vm3, %v1513_v32, %v1501_v29 }
 0x51b   :  { %v1509_v31 = vpop.permute.xlu1 %1508 }
 0x51c   :  { %v1507_v34 = vpop.permute.xlu0 %1506  ;;  %v1519_v37 = vsel %vm1517_vm4, %v1516_v35, %v1509_v31 }
 0x51d   :  { %v1518_v36 = vsel %vm1517_vm4, %v1515_v33, %v1507_v34 }
 0x51e   :  { %1853 = vmatprep.mubr.msk.f32.mxu0 %vm71_vm0, %v1518_v36 }
 0x51f   :  { %1854 = vmatmul.mubr.msk.f32.vlgmr.msra.gmra.mxu0 %vm71_vm0, %v1519_v37 }
 0x5df   :  { %v1855_v39 = vpop.f32.mrf.mxu0 }
 0x5e0   :  { %v1609_v40 = vadd.f32 %v1855_v39, %v1705_v38 }
 0x5e1   :  { %v1603_v41 = vpop.f32.mrf.mxu0 }
 0x5e2   :  { %v1604_v42 = vadd.f32 %v1705_v38, %v1603_v41  ;;  %v1613_v43 = vadd.f32 %v1609_v40, %v2065_v5 }
 0x5e4   :  { %v1617_v44 = vsel %vm71_vm0, %v1613_v43, 0.0  ;;  %v1612_v45 = vadd.f32 %v1604_v42, %v2061_v2 }
 0x5e5   :  { %1618 = vadd.xlane.f32.xlu1 %v1617_v44 }
 0x5e6   :  { %v1614_v15 = vsel %vm71_vm0, %v1612_v45, 0.0 }
 0x5e7   :  { %1615 = vadd.xlane.f32.xlu0 %v1614_v15 }
 0x66e   :  { %v1619_v16 = vpop.xlane.xlu1 %1618 }
 0x66f   :  { %v1622_v46 = vmul.f32 0.03125, %v1619_v16 }
 0x670   :  { %v1616_v47 = vpop.xlane.xlu0 %1615 }
 0x671   :  { %v1621_v48 = vmul.f32 0.03125, %v1616_v47  ;;  %v1624_v49 = vsub.f32 %v1613_v43, %v1622_v46 }
 0x673   :  { %v1623_v50 = vsub.f32 %v1612_v45, %v1621_v48  ;;  %v1626_v53 = vmul.f32 %v1624_v49, %v1624_v49 }
 0x675   :  { %v1625_v51 = vmul.f32 %v1623_v50, %v1623_v50  ;;  %v1630_v5 = vsel %vm71_vm0, %v1626_v53, 0.0 }
 0x677   :  { %v1627_v52 = vsel %vm71_vm0, %v1625_v51, 0.0 }
 0x678   :  { %1628 = vadd.xlane.f32.xlu0 %v1627_v52 }
 0x67c   :  { %1631 = vadd.xlane.f32.xlu0 %v1630_v5 }
 0x701   :  { %v1629_v54 = vpop.xlane.xlu0 %1628 }
 0x702   :  { %v1633_v2 = vmul.f32 0.03125, %v1629_v54 }
 0x704   :  { %v1635_v55 = vadd.f32 1e-05, %v1633_v2 }
 0x705   :  { %v1632_v56 = vpop.xlane.xlu0 %1631 }
 0x706   :  { %1903 = vrsqrt.f32 %v1635_v55  ;;  %v1634_v57 = vmul.f32 0.03125, %v1632_v56 }
 0x708   :  { %v1636_v58 = vadd.f32 1e-05, %v1634_v57 }
 0x70a   :  { %1905 = vrsqrt.f32 %v1636_v58 }
 0x713   :  { %v1904_v59 = vpop.eup %1903 }
 0x714   :  { %v1639_v61 = vmul.f32 %v1904_v59, %v1623_v50 }
 0x716   :  { %v1648_v63 = vmul.f32 %v1708_v60, %v1639_v61 }
 0x717   :  { %v1906_v0 = vpop.eup %1905 }
 0x718   :  { %v1640_v1 = vmul.f32 %v1906_v0, %v1624_v49  ;;  %v1657_v3 = vadd.f32 %v1709_v62, %v1648_v63 }
 0x71a   :  { %v1649_v4 = vmul.f32 %v1708_v60, %v1640_v1  ;;  %1659 = vst.msk [vmem:[#allocation8] sm:$0xff] %vm71_vm0, %v1657_v3 }
 0x71c   :  { %v1658_v7 = vadd.f32 %v1709_v62, %v1649_v4 }
 0x71e   :  { %1660 = vst.msk [vmem:[#allocation8 + $0x8] sm:$0xff] %vm71_vm0, %v1658_v7 }
 0x71f   :  { %1978 = shalt.err (!%p1975_p5)
}
 0x720   :  { %1672 = dma.vmem_to_hbm [thread:$0]  %s1667_s24, 256, %s2272_s6, [#allocation4], %s1995_s26, %s1995_s26, %s1996_s27  }
 0x721   :  { %1991 = dma.done.wait [#allocation4], 256  }
 0x722   :  { %1992 = vsyncadd [#allocation4], 4294967040 }
 0x723   :  { %1676 = vsyncpa [#allocation3], 1 }
 0x724   :  { %1677 = vsyncpa [#allocation6], 1 }
 0x725   :  { %1678 = vsyncpa [#allocation4], 1 }

</bundles_post_ra>
